<compile_context>
chip_gen: v6e
topology: v6e:2x2x1
jax: 0.10.0
libtpu: 0.0.40
codegen_flags: <defaults>
</compile_context>

<pallas_src>
import math

import jax
import jax.numpy as jnp
from jax.experimental import pallas as pl
from jax.experimental.pallas import tpu as pltpu

_LANE = 128
_SUB = 8
# Safe on every generation (v5e/v6e physical VMEM 128 MiB, v7x 64 MiB); our
# double-buffered working set is <= ~8 MiB so this is pure headroom.
_VMEM_LIMIT = 48 * 1024 * 1024


def _plan_blocks(rows, max_block_rows, parallel):
    """Split `rows` 128-lane rows into `nb` equal blocks of `tr` rows.

    tr is a multiple of 8 and <= max_block_rows; nb is a multiple of
    `parallel`.  Padded rows = tr * nb >= rows.  Block sizes are balanced
    (instead of always max_block_rows) to keep padding small.
    """
    nb = max(1, pl.cdiv(rows, max_block_rows))
    nb = pl.cdiv(nb, parallel) * parallel
    tr = pl.cdiv(pl.cdiv(rows, nb), _SUB) * _SUB
    return tr, nb


# ---------------------------------------------------------------------------
# Kernel 1: per-batch sum of squared error  (x_hat - target)^2 summed over CHW
# ---------------------------------------------------------------------------
def _sse_kernel(x_ref, t_ref, o_ref):
    # grid = (batch, row_blocks); axis 1 is the reduction axis.
    k = pl.program_id(1)

    @pl.when(k == 0)
    def _():
        o_ref[...] = jnp.zeros_like(o_ref)

    x = x_ref[0].astype(jnp.float32)          # (TR, 128), cast in-VMEM
    t = t_ref[0].astype(jnp.float32)
    d = x - t
    sq = d * d
    tr = sq.shape[0]
    # Sublane-fold to (8, 128): pure vreg-wise VPU adds, no cross-lane XLU work.
    partial = sq.reshape(tr // _SUB, _SUB, _LANE).sum(axis=0)
    o_ref[...] += partial[None]


def per_batch_sse(x_hat, target, max_block_rows=4096):
    """Sum of squared error per batch element. Inputs (N, C, H, W) -> (N,) f32."""
    n = x_hat.shape[0]
    d = 1
    for s in x_hat.shape[1:]:
        d *= s
    xf = x_hat.reshape(n, d)
    tf = target.reshape(n, d)

    rows = pl.cdiv(d, _LANE)
    tr, nb = _plan_blocks(rows, max_block_rows, 1)
    dp = tr * nb * _LANE
    if dp != d:  # zero padding contributes 0 to the SSE (same pad in both)
        xf = jnp.pad(xf, ((0, 0), (0, dp - d)))
        tf = jnp.pad(tf, ((0, 0), (0, dp - d)))
    xm = xf.reshape(n, tr * nb, _LANE)
    tm = tf.reshape(n, tr * nb, _LANE)

    partials = pl.pallas_call(
        _sse_kernel,
        out_shape=jax.ShapeDtypeStruct((n, _SUB, _LANE), jnp.float32),
        grid_spec=pltpu.PrefetchScalarGridSpec(
            num_scalar_prefetch=0,
            grid=(n, nb),
            in_specs=[
                pl.BlockSpec((1, tr, _LANE), lambda b, k: (b, k, 0)),
                pl.BlockSpec((1, tr, _LANE), lambda b, k: (b, k, 0)),
            ],
            out_specs=pl.BlockSpec((1, _SUB, _LANE), lambda b, k: (b, 0, 0)),
        ),
        compiler_params=pltpu.CompilerParams(
            dimension_semantics=("parallel", "arbitrary"),
            vmem_limit_bytes=_VMEM_LIMIT,
        ),
    )(xm, tm)
    # Single cheap cross-lane reduce on an (N, 8, 128) array in the wrapper.
    return jnp.sum(partials, axis=(1, 2))


# ---------------------------------------------------------------------------
# Kernel 2: fused sum(log(likelihoods)) over all likelihood tensors -> scalar
# ---------------------------------------------------------------------------
def _logsum_kernel(l_ref, o_ref):
    # grid = (parallel_partials, reduction_blocks); axis 1 is the reduction.
    k = pl.program_id(1)

    @pl.when(k == 0)
    def _():
        o_ref[...] = jnp.zeros_like(o_ref)

    lg = jnp.log(l_ref[...].astype(jnp.float32))    # (TR, 128); log -> EUP slot
    tr = lg.shape[0]
    partial = lg.reshape(tr // _SUB, _SUB, _LANE).sum(axis=0)
    o_ref[...] += partial[None]


def fused_log_sum(likelihood_list, max_block_rows=4096, parallel_blocks=2):
    """sum(log(x)) over all elements of all tensors, in a single launch."""
    flats = [lk.reshape(-1) for lk in likelihood_list]
    flat = flats[0] if len(flats) == 1 else jnp.concatenate(flats)
    total = flat.shape[0]

    rows = pl.cdiv(total, _LANE)
    tr, nb = _plan_blocks(rows, max_block_rows, parallel_blocks)
    p = parallel_blocks if nb >= parallel_blocks else 1
    k_steps = nb // p
    total_pad = tr * nb * _LANE
    if total_pad != total:  # pad with 1.0 -> log(1) = 0 contributes nothing
        flat = jnp.pad(flat, (0, total_pad - total), constant_values=1.0)
    mat = flat.reshape(tr * nb, _LANE)

    partials = pl.pallas_call(
        _logsum_kernel,
        out_shape=jax.ShapeDtypeStruct((p, _SUB, _LANE), jnp.float32),
        grid_spec=pltpu.PrefetchScalarGridSpec(
            num_scalar_prefetch=0,
            grid=(p, k_steps),
            in_specs=[
                pl.BlockSpec((tr, _LANE), lambda pi, ki: (pi * k_steps + ki, 0)),
            ],
            out_specs=pl.BlockSpec((1, _SUB, _LANE), lambda pi, ki: (pi, 0, 0)),
        ),
        compiler_params=pltpu.CompilerParams(
            dimension_semantics=("parallel", "arbitrary"),
            vmem_limit_bytes=_VMEM_LIMIT,
        ),
    )(mat)
    return jnp.sum(partials)


# ---------------------------------------------------------------------------
# RateDistortionLoss.forward equivalent
# ---------------------------------------------------------------------------
def rate_distortion_loss(output, target, lmbda):
    n, c, h, w = target.shape
    num_pixels = n * h * w

    # bpp = sum_t sum(log(t)) / (-log(2) * num_pixels); denominator is shared,
    # so all likelihood tensors can be fused into one log-sum launch.
    log_total = fused_log_sum(list(output["likelihoods"].values()))
    bpp_loss = log_total / jnp.float32(-math.log(2) * num_pixels)

    sse = per_batch_sse(output["x_hat"], target)  # (N,) f32

    out = {"bpp_loss": bpp_loss}
    if isinstance(lmbda, (list, tuple)):
        lmb = jnp.asarray(lmbda, dtype=jnp.float32)
        mse_per_sample = sse / jnp.float32(c * h * w)
        out["mse_loss"] = jnp.sum(mse_per_sample * lmb) / jnp.float32(n)
        out["loss"] = 255.0 ** 2 * out["mse_loss"] + out["bpp_loss"]
    else:
        out["mse_loss"] = jnp.sum(sse) / jnp.float32(n * c * h * w)
        out["loss"] = jnp.float32(lmbda) * 255.0 ** 2 * out["mse_loss"] + out["bpp_loss"]
    return out


# ---------------------------------------------------------------------------
# Pure-JAX reference for correctness check
# ---------------------------------------------------------------------------
def _reference(output, target, lmbda):
    n, c, h, w = target.shape
    num_pixels = n * h * w
    bpp = sum(
        jnp.sum(jnp.log(lk)) / (-math.log(2) * num_pixels)
        for lk in output["likelihoods"].values()
    )
    if isinstance(lmbda, (list, tuple)):
        mse = (
            sum(
                jnp.mean((output["x_hat"][b] - target[b]) ** 2) * lmbda[b]
                for b in range(n)
            )
            / n
        )
        loss = 255.0 ** 2 * mse + bpp
    else:
        mse = jnp.mean((output["x_hat"] - target) ** 2)
        loss = lmbda * 255.0 ** 2 * mse + bpp
    return {"bpp_loss": bpp, "mse_loss": mse, "loss": loss}


if __name__ == "__main__":
    key = jax.random.PRNGKey(0)
    k1, k2, k3, k4 = jax.random.split(key, 4)

    N, C, H, W = 2, 4, 16, 16
    target = jax.random.uniform(k1, (N, C, H, W), dtype=jnp.float32)
    x_hat = target + 0.05 * jax.random.normal(k2, (N, C, H, W), dtype=jnp.float32)

    # Typical compressai-style likelihoods: 'y' at /4 resolution, 'z' at /8.
    likelihoods = {
        "y": jax.random.uniform(
            k3, (N, 8, H // 4, W // 4), dtype=jnp.float32, minval=0.01, maxval=1.0
        ),
        "z": jax.random.uniform(
            k4, (N, 4, H // 8, W // 8), dtype=jnp.float32, minval=0.01, maxval=1.0
        ),
    }
    output = {"x_hat": x_hat, "likelihoods": likelihoods}

    # Scalar-lambda branch
    lmbda_scalar = 0.0130
    res_s = rate_distortion_loss(output, target, lmbda_scalar)
    ref_s = _reference(output, target, lmbda_scalar)

    # List-lambda branch (per-batch Lagrangian)
    lmbda_list = [0.0067, 0.0250]
    res_l = rate_distortion_loss(output, target, lmbda_list)
    ref_l = _reference(output, target, lmbda_list)

    jax.block_until_ready((res_s["loss"], res_l["loss"]))

    for res, ref in ((res_s, ref_s), (res_l, ref_l)):
        for k in ("bpp_loss", "mse_loss", "loss"):
            assert jnp.allclose(res[k], ref[k], rtol=1e-5, atol=1e-6), (k, res[k], ref[k])

    print("KERNEL_OK")
</pallas_src>

<mosaic_0001>
module attributes {stable_mosaic.version = 11 : i64} {
  func.func @_logsum_kernel(%arg0: i32, %arg1: i32, %arg2: memref<8x128xf32, #tpu.memory_space<vmem>>, %arg3: memref<1x8x128xf32, #tpu.memory_space<vmem>>) attributes {dimension_semantics = [#tpu.dimension_semantics<parallel>, #tpu.dimension_semantics<arbitrary>], iteration_bounds = array<i64: 2, 1>, scalar_prefetch = 0 : i64, scratch_operands = 0 : i64, tpu.core_type = #tpu.core_type<tc>, window_params = [{transform_indices = @transform_0, window_bounds = array<i64: 8, 128>}, {transform_indices = @transform_1, window_bounds = array<i64: 1, 8, 128>}]} {
    %c0_i32 = arith.constant 0 : i32
    %0 = arith.cmpi eq, %arg1, %c0_i32 : i32
    %1 = arith.extui %0 : i1 to i32
    %c0_i32_0 = arith.constant 0 : i32
    %2 = arith.cmpi ne, %1, %c0_i32_0 : i32
    scf.if %2 {
      %cst_8 = arith.constant 0.000000e+00 : f32
      %11 = vector.broadcast %cst_8 : f32 to vector<1x8x128xf32>
      %c0_9 = arith.constant 0 : index
      %c0_10 = arith.constant 0 : index
      %c0_11 = arith.constant 0 : index
      %12 = vector.load %arg3[%c0_9, %c0_10, %c0_11] : memref<1x8x128xf32, #tpu.memory_space<vmem>>, vector<1x8x128xf32>
      tpu.vector_store %arg3[%c0_9, %c0_10, %c0_11], %11 {strides = array<i32>} : memref<1x8x128xf32, #tpu.memory_space<vmem>>, vector<1x8x128xf32>,
    } else {
    }
    %c0 = arith.constant 0 : index
    %c0_1 = arith.constant 0 : index
    %3 = vector.load %arg2[%c0, %c0_1] : memref<8x128xf32, #tpu.memory_space<vmem>>, vector<8x128xf32>
    %4 = math.log %3 : vector<8x128xf32>
    %5 = vector.shape_cast %4 : vector<8x128xf32> to vector<1x8x128xf32>
    %cst = arith.constant dense<0.000000e+00> : vector<8x128xf32>
    %6 = vector.multi_reduction <add>, %5, %cst [0] : vector<1x8x128xf32> to vector<8x128xf32>
    %c0_2 = arith.constant 0 : index
    %c0_3 = arith.constant 0 : index
    %c0_4 = arith.constant 0 : index
    %7 = vector.load %arg3[%c0_2, %c0_3, %c0_4] : memref<1x8x128xf32, #tpu.memory_space<vmem>>, vector<1x8x128xf32>
    %8 = vector.shape_cast %6 : vector<8x128xf32> to vector<1x8x128xf32>
    %9 = arith.addf %7, %8 : vector<1x8x128xf32>
    %c0_5 = arith.constant 0 : index
    %c0_6 = arith.constant 0 : index
    %c0_7 = arith.constant 0 : index
    %10 = vector.load %arg3[%c0_5, %c0_6, %c0_7] : memref<1x8x128xf32, #tpu.memory_space<vmem>>, vector<1x8x128xf32>
    tpu.vector_store %arg3[%c0_5, %c0_6, %c0_7], %9 {strides = array<i32>} : memref<1x8x128xf32, #tpu.memory_space<vmem>>, vector<1x8x128xf32>,
    return
  }
  func.func @transform_0(%arg0: i32, %arg1: i32) -> (i32, i32) {
    %c1_i32 = arith.constant 1 : i32
    %0 = arith.muli %arg0, %c1_i32 : i32
    %1 = arith.addi %0, %arg1 : i32
    %c0_i32 = arith.constant 0 : i32
    %c0_i32_0 = arith.constant 0 : i32
    return %1, %c0_i32 : i32, i32
  }
  func.func @transform_1(%arg0: i32, %arg1: i32) -> (i32, i32, i32) {
    %c0_i32 = arith.constant 0 : i32
    %c0_i32_0 = arith.constant 0 : i32
    %c0_i32_1 = arith.constant 0 : i32
    return %arg0, %c0_i32, %c0_i32_0 : i32, i32, i32
  }
}

</mosaic_0001>

<bundles_post_ra>
// kernel: tpu_custom_call.1
= control target key start
LH: loop header
LB: loop body
LE: loop exit
PB: predicated region body
PF: predicated region fallthrough
CT: control target
= control target key end

     0   :  { %6 = vsyncpa [#allocation3], 0  ;;  %s587_s0 = inlined_call_operand.hbm [shape: f32[16,128], index: 0, kind: input, shape index: {}]   ;;  %s588_s1 = inlined_call_operand.hbm [shape: f32[2,8,128], index: 1, kind: output, shape index: {}]  }
   0x1   :  { %8 = vsyncpa [#allocation3 + $0x1], 0 }
   0x2   :  { %9 = vsyncpa [#allocation4], 0 }
   0x3   :  { %11 = vsyncpa [#allocation4 + $0x1], 0  ;;  %s453_s6 = smov 0   ;;  %s455_s7 = smov 0  }
   0x4   :  { %s457_s8 = smov 0   ;;  %s459_s9 = smov 0  }
   0x5   :  { %s461_s10 = smov 0   ;;  %s463_s11 = smov 0  }
   0x6 LB: > { %s253_s12 = sadd.s32 4294967295, %s439_s11   ;;  %s254_s13 = sadd.s32 4294967294, %s439_s11   ;;  %s439_s11 = sphi %s463_s11, %s17_s11   ;;  %s435_s10 = sphi %s461_s10, %s600_s10   ;;  %s431_s9 = sphi %s459_s9, %s599_s9   ;;  %s427_s8 = sphi %s457_s8, %s598_s8   ;;  %s423_s7 = sphi %s455_s7, %s597_s7   ;;  %s419_s6 = sphi %s453_s6, %s596_s6  }
   0x7   : > { %s29_s14 = sadd.s32 1, %s435_s10  ;;  %s38_s15 = sadd.s32 1, %s427_s8 }
   0x8   : > { %p31_p0 = scmp.ge.s32.totalorder %s29_s14, 2  ;;  %p45_p1 = scmp.ne.s32.totalorder %s427_s8, %s423_s7 }
   0x9   : > { %p46_p2 = scmp.eq.s32.totalorder %s439_s11, 0  ;;  %p51_p3 = scmp.ne.s32.totalorder %s423_s7, %s419_s6 }
   0xa   : > { %s602_s14 = smov (%p31_p0, %s29_s14), 0  ;;  %p52_p5 = scmp.eq.s32.totalorder %s253_s12, 0 }
   0xb   : > { %p494_p4 = por %p46_p2, %p45_p1  ;;  %s35_s17 = ssub.s32 %s435_s10, %s602_s14 }
   0xc   : > { %p75_p6 = scmp.eq.s32.totalorder %s253_s12, 1  ;;  %p36_p7 = scmp.eq.s32.totalorder %s35_s17, 0 }
   0xd   : > { %p500_p8 = por %p52_p5, %p51_p3  ;;  %p81_p10 = scmp.eq.s32.totalorder %s254_s13, 1 }
   0xe   : > { %p504_p9 = por %p75_p6, %p45_p1  ;;  %p278_p13 = scmp.lt.s32.totalorder %s439_s11, 2 }
   0xf   : > { %s509_s20 = scalar_select %p36_p7, %s427_s8, %s38_s15  }
  0x10   : > { %p511_p11 = por %p81_p10, %p51_p3  ;;  %s101_s22 = sand.u32 1, %s427_s8  }
  0x11   : > { %s257_s23 = sshll.u32 %s101_s22, 3  ;;  %s258_s24 = sshll.u32 %s435_s10, 7 }
  0x12   : > { %s592_s21 = scalar_select %p511_p11, 1, 0 }
  0x13   : > { %s111_s27 = scalar_lea.hbm %s587_s0, %s258_s24  ;;  %s105_s28 = scalar_lea.vmem [#allocation2], %s257_s23 }
  0x14   : > { %s113_s29 = sshll.u32 %s105_s28, 4  ;;  %p524_p0 = pnand %p278_p13, %p494_p4  ;;  %s114_s29 = int_to_ptr.vmem [resolvable:$true] %s113_s29 }
  0x15   : > { %p259_p1 = scmp.ge.s32.totalorder %s439_s11, 1  ;;  %p118_p2 = scmp.lt.s32.totalorder %s439_s11, 3 }
  0x16   : > { %s102_s2 = scalar_lea.sflag [#allocation3], %s101_s22  ;;  %p333_p3 = pneg %p524_p0 }
  0x17   : > { %s344_s3 = scalar_lea.vmem %s114_s29, 128  ;;  %s441_s4 = smov [#allocation2]  }
  0x18   : > { %p345_p5 = scmp.ne.s32.totalorder %s114_s29, %s344_s3  ;;  %s349_s5 = sshll.u32 %s441_s4, 4  ;;  %s350_s5 = int_to_ptr.vmem [resolvable:$false] %s349_s5 }
  0x19   : > { %s351_s12 = scalar_lea.vmem %s350_s5, 256  ;;  %p352_p10 = scmp.lt.s32.totalorder %s114_s29, %s350_s5 }
  0x1a   : > { %p347_p6 = pnand %p345_p5, %p333_p3  ;;  %p353_p12 = scmp.lt.s32.totalorder %s351_s12, %s344_s3 }
  0x1c   : > { %p348_p7 = pneg %p347_p6  ;;  %p354_p4 = por %p353_p12, %p352_p10 }
  0x1e   : > { %p355_p13 = pnand %p354_p4, %p348_p7 }
  0x20   : > { %358 = shalt.err (!%p355_p13)
}
  0x21   : > { %273 = dma.hbm_to_vmem [thread:$0]  (!%p524_p0), %s111_s27, 128, %s114_s29, %s102_s2  }
  0x22   : > { %p119_p11 = pnand %p259_p1, %p118_p2 }
  0x23   : > { %s539_s13 = sand.u32 (!%p119_p11), 1, %s423_s7  }
  0x24   : > { %122 = sbr.rel (%p119_p11) target bundleno = 72 (0x48), region = 24  ;;  %s260_s15 = sshll.u32 (!%p119_p11), %s539_s13, 3 }
  0x25   : > { %s125_s16 = scalar_lea.sflag (!%p119_p11), [#allocation3], %s539_s13  ;;  %s128_s17 = scalar_lea.vmem (!%p119_p11), [#allocation2], %s260_s15 }
  0x29   : > { %410 = dma.done.wait (%p500_p8), %s125_s16, 128  }
  0x2a   : > { %412 = vsyncadd (%p500_p8), %s125_s16, 4294967168  ;;  %v153_v0 = vld [vmem:[%s128_s17] sm:$0xff]  ;;  %s263_s22 = sshll.u32 %s431_s9, 7  ;;  %s146_s23 = scalar_lea.vmem [#allocation5], %s260_s15 }
  0x2b   : > { %329 = vlog2.f32 %v153_v0  ;;  %s174_s24 = sshll.u32 %s146_s23, 4  ;;  %s172_s27 = scalar_lea.hbm %s588_s1, %s263_s22  ;;  %s175_s24 = int_to_ptr.vmem [resolvable:$true] %s174_s24 }
  0x2c   : > { %s161_s28 = scalar_lea.sflag [#allocation4], %s539_s13  ;;  %s359_s29 = scalar_lea.vmem %s175_s24, 128 }
  0x2d   : > { %p360_p11 = scmp.ne.s32.totalorder %s175_s24, %s359_s29  ;;  %s442_s18 = smov [#allocation5]  }
  0x2e   : > { %s363_s30 = sshll.u32 %s442_s18, 4  ;;  %s364_s30 = int_to_ptr.vmem [resolvable:$false] %s363_s30 }
  0x2f   : > { %p361_p8 = pnand %p360_p11, %p504_p9  ;;  %s365_s2 = scalar_lea.vmem %s364_s30, 256 }
  0x30   : > { %p366_p0 = scmp.lt.s32.totalorder %s175_s24, %s364_s30  ;;  %p367_p1 = scmp.lt.s32.totalorder %s365_s2, %s359_s29 }
  0x31   : > { %p362_p12 = pneg %p361_p8 }
  0x32   : > { %p368_p2 = por %p367_p1, %p366_p0 }
  0x34   : > { %p369_p3 = pnand %p368_p2, %p362_p12 }
  0x38   : > { %v330_v1 = vpop.eup %329 }
  0x39   : > { %v155_v2 = vmul.f32 0.6931472, %v330_v1 }
  0x3b   : > { %159 = vst [vmem:[%s146_s23] sm:$0xff] %v155_v2 }
  0x3c   : > { %372 = shalt.err (!%p369_p3)
}
  0x3d   : > { %s373_s9 = scalar_lea.hbm %s172_s27, 128  ;;  %s377_s5 = scalar_lea.hbm %s588_s1, 256 }
  0x3e   : > { %p374_p5 = scmp.ne.s32.totalorder %s172_s27, %s373_s9  ;;  %p378_p10 = scmp.lt.s32.totalorder %s172_s27, %s588_s1 }
  0x3f   : > { %p379_p4 = scmp.lt.s32.totalorder %s377_s5, %s373_s9 }
  0x40   : > { %p375_p6 = pnand %p374_p5, %p504_p9 }
  0x41   : > { %p380_p13 = por %p379_p4, %p378_p10 }
  0x42   : > { %p376_p7 = pneg %p375_p6 }
  0x44   : > { %p381_p11 = pnand %p380_p13, %p376_p7 }
  0x46   : > { %384 = shalt.err (!%p381_p11)
}
  0x47   : > { %268 = dma.vmem_to_hbm [thread:$0]  (%p504_p9), %s175_s24, 128, %s172_s27, %s161_s28  }
  0x48 PF: > { %s186_s15 = sand.u32 1, %s419_s6   ;;  %p594_p8 = scmp.ne.s32.totalorder %s592_s21, 0 }
  0x49   : > { %p595_p12 = scmp.ge.s32.totalorder %s439_s11, 2  ;;  %s187_s16 = scalar_lea.sflag [#allocation4], %s186_s15 }
  0x4b   : > { %p275_p0 = pnand %p595_p12, %p594_p8 }
  0x4d   : > { %p276_p1 = pneg %p275_p0 }
  0x4f   : > { %414 = dma.done.wait (%p276_p1), %s187_s16, 128  }
  0x50   : > { %416 = vsyncadd (%p276_p1), %s187_s16, 4294967168  ;;  %s17_s11 = sadd.s32 1, %s439_s11   ;;  %s596_s6 = smov %s423_s7 }
  0x51   : > { %p14_p2 = scmp.ge.s32.totalorder %s17_s11, 4   ;;  %s597_s7 = smov %s427_s8 }
  0x52   : > { %s598_s8 = smov %s509_s20  ;;  %s599_s9 = smov %s435_s10 }
  0x53   : > { %s600_s10 = smov %s602_s14  ;;  %16 = sbr.rel (!%p14_p2) target bundleno = 6 (0x6), region = 73 }
  0x58   :  { %192 = vsyncpa [#allocation3], 1 }
  0x59   :  { %194 = vsyncpa [#allocation3 + $0x1], 1 }
  0x5a   :  { %195 = vsyncpa [#allocation4], 1 }
  0x5b   :  { %197 = vsyncpa [#allocation4 + $0x1], 1 }

</bundles_post_ra>
